<compile_context>
chip_gen: v6e
topology: v6e:2x2x1
jax: 0.10.0
libtpu: 0.0.40
codegen_flags: <defaults>
</compile_context>

<pallas_src>
import functools

import numpy as np
import jax
import jax.numpy as jnp
from jax.experimental import pallas as pl
from jax.experimental.pallas import tpu as pltpu


# ---- problem sizes (small but consistent with the module's formulas) -----------
NXD = 16                 # original module uses 128
NPHI = NXD               # nphi = nxd
NRD = int(NXD * 1.42)    # nrd = int(nxd * 1.42)  -> 22
N = NXD * NXD            # flattened image length    (256)
P = NRD * NPHI           # flattened sinogram length (352)
NUM_ITER = 5             # module's num_iter

# Streamed-path tile over the sinogram (P) axis; P is padded to a multiple of
# P_TILE, padded A rows / sino bins are zero and contribute nothing.
P_TILE = 256

# If A's in-kernel f32 footprint is below this, keep it fully VMEM-resident.
RESIDENT_A_F32_BUDGET = 8 * 1024 * 1024


def make_system_matrix(nxd, nrd, nphi):
    """Same construction as make_torch_system_matrix, in numpy."""
    sm = np.zeros((nrd * nphi, nxd * nxd), dtype=np.float32)
    for xv in range(nxd):
        for yv in range(nxd):
            for ph in range(nphi):
                yp = -(xv - nxd * 0.5) * np.sin(ph * np.pi / nphi) + \
                     (yv - nxd * 0.5) * np.cos(ph * np.pi / nphi)
                yp_bin = int(yp + nrd / 2.0)
                sm[yp_bin + ph * nrd, xv + yv * nxd] = 1.0
    return sm


def prepare_mlem_operands(sys_mat_np, p_tile=P_TILE):
    """One-time host-side prep (outside the jitted forward, per review):
       * pad A's P axis to a multiple of p_tile and store as int8 (exact for
         {0,1}; 4x less HBM footprint/traffic than f32, 2x less than bf16),
       * sens_image = A^T @ 1 and its hoisted reciprocal 1/(sens + eps)."""
    p, n = sys_mat_np.shape
    p_pad = ((p + p_tile - 1) // p_tile) * p_tile
    a_pad = np.zeros((p_pad, n), dtype=np.int8)
    a_pad[:p, :] = sys_mat_np.astype(np.int8)
    sens = sys_mat_np.sum(axis=0, dtype=np.float32)            # A^T @ ones (exact ints)
    inv_sens = (1.0 / (sens + np.float32(1e-9))).astype(np.float32)
    return jnp.asarray(a_pad), jnp.asarray(inv_sens.reshape(1, n))


# ---- Path A: A fully VMEM-resident, all iterations in one grid step --------------
def _mlem_resident_kernel(num_iter, sino_ref, inv_sens_ref, a_ref, out_ref):
    a = a_ref[...].astype(jnp.float32)          # (P_PAD, N): upcast ONCE, exact for {0,1}
    sino = sino_ref[...]                        # (1, P_PAD)  padded bins are zero
    inv_sens = inv_sens_ref[...]                # (1, N)      hoisted 1/(sens+eps)

    def body(_, recon):
        # forward projection: fp = recon . A^T  (contract N)
        fp = jax.lax.dot_general(recon, a, (((1,), (1,)), ((), ())),
                                 preferred_element_type=jnp.float32)     # (1, P_PAD)
        ratio = sino / (fp + 1e-9)
        # back projection:    bp = ratio . A    (contract P)
        bp = jax.lax.dot_general(ratio, a, (((1,), (0,)), ((), ())),
                                 preferred_element_type=jnp.float32)     # (1, N)
        return recon * (bp * inv_sens)          # multiplicative MLEM update

    recon0 = jnp.ones((1, a_ref.shape[1]), jnp.float32)
    out_ref[...] = jax.lax.fori_loop(0, num_iter, body, recon0)


def _mlem_forward_resident(sino_row, inv_sens_row, a_pad_i8, num_iter):
    p_pad, n = a_pad_i8.shape
    return pl.pallas_call(
        functools.partial(_mlem_resident_kernel, num_iter),
        out_shape=jax.ShapeDtypeStruct((1, n), jnp.float32),
        grid_spec=pltpu.PrefetchScalarGridSpec(
            num_scalar_prefetch=0,
            grid=(1,),
            in_specs=[
                pl.BlockSpec((1, p_pad), lambda i: (0, 0)),   # sinogram (resident)
                pl.BlockSpec((1, n), lambda i: (0, 0)),       # 1/(sens+eps) (resident)
                pl.BlockSpec((p_pad, n), lambda i: (0, 0)),   # whole A, int8 (resident)
            ],
            out_specs=pl.BlockSpec((1, n), lambda i: (0, 0)),
        ),
        compiler_params=pltpu.CompilerParams(
            dimension_semantics=("arbitrary",),
            vmem_limit_bytes=32 * 1024 * 1024,
        ),
    )(sino_row, inv_sens_row, a_pad_i8)


# ---- Path B: A streamed from HBM in (P_TILE, N) row tiles -------------------------
def _mlem_streamed_kernel(sino_ref, inv_sens_ref, a_ref, out_ref, recon_ref, bp_ref):
    it = pl.program_id(0)
    p = pl.program_id(1)
    last_p = pl.num_programs(1) - 1

    # One-time init: initial image = ones.
    @pl.when(jnp.logical_and(it == 0, p == 0))
    def _():
        recon_ref[...] = jnp.ones_like(recon_ref)

    # Per-iteration init of the back-projection accumulator.
    @pl.when(p == 0)
    def _():
        bp_ref[...] = jnp.zeros_like(bp_ref)

    # int8 -> f32 upcast of the streamed tile (exact for {0,1}).  At the real
    # problem size the kernel is HBM-bound on streaming A, so this VPU work
    # hides under the DMA; a bf16 compute path would halve the temp but makes
    # recon/ratio lossy (breaks 1e-4 agreement with the f32 reference).
    a_tile = a_ref[...].astype(jnp.float32)               # (P_TILE, N)
    recon = recon_ref[...]                                 # (1, N)

    # Fused fp -> ratio -> bp for this P-tile: A read from HBM once per iteration.
    fp = jax.lax.dot_general(recon, a_tile, (((1,), (1,)), ((), ())),
                             preferred_element_type=jnp.float32)          # (1, P_TILE)
    ratio = sino_ref[...] / (fp + 1e-9)
    bp_ref[...] += jax.lax.dot_general(ratio, a_tile, (((1,), (0,)), ((), ())),
                                       preferred_element_type=jnp.float32)  # (1, N)

    # End of the P sweep: multiplicative MLEM update, expose current recon.
    @pl.when(p == last_p)
    def _():
        new_recon = recon_ref[...] * (bp_ref[...] * inv_sens_ref[...])
        recon_ref[...] = new_recon
        out_ref[...] = new_recon


def _mlem_forward_streamed(sino_row, inv_sens_row, a_pad_i8, num_iter):
    p_pad, n = a_pad_i8.shape
    p_blocks = p_pad // P_TILE
    return pl.pallas_call(
        _mlem_streamed_kernel,
        out_shape=jax.ShapeDtypeStruct((1, n), jnp.float32),
        grid_spec=pltpu.PrefetchScalarGridSpec(
            num_scalar_prefetch=0,
            grid=(num_iter, p_blocks),
            in_specs=[
                pl.BlockSpec((1, P_TILE), lambda it, p: (0, p)),   # sino tile
                pl.BlockSpec((1, n), lambda it, p: (0, 0)),        # 1/(sens+eps), resident
                pl.BlockSpec((P_TILE, n), lambda it, p: (p, 0)),   # A row tile, streamed
            ],
            out_specs=pl.BlockSpec((1, n), lambda it, p: (0, 0)),  # recon (resident)
            scratch_shapes=[
                pltpu.VMEM((1, n), jnp.float32),   # recon carried across grid steps
                pltpu.VMEM((1, n), jnp.float32),   # back-projection accumulator
            ],
        ),
        compiler_params=pltpu.CompilerParams(
            # Both axes sequential: iterations depend on each other, P reduces into bp.
            dimension_semantics=("arbitrary", "arbitrary"),
            # Sized for the real problem (nxd=128, N=16384, P_TILE=256):
            # 2 x 4 MiB int8 A double-buffer + 16 MiB f32 upcast temp + ~2 MiB of
            # row scratch -- fits v7x's 64 MiB physical VMEM with headroom.
            vmem_limit_bytes=40 * 1024 * 1024,
        ),
    )(sino_row, inv_sens_row, a_pad_i8)


# ---- top-level forward (thin jitted glue: pad sino, pick a path, reshape) --------
@functools.partial(jax.jit, static_argnames=("num_iter", "nxd", "force_streamed"))
def mlem_net_forward(sino, a_pad_i8, inv_sens_row, *, num_iter, nxd, force_streamed=False):
    p_pad, n = a_pad_i8.shape
    assert n == nxd * nxd
    sino_row = jnp.pad(sino.reshape(1, -1).astype(jnp.float32),
                       ((0, 0), (0, p_pad - sino.size)))
    resident = (not force_streamed) and (p_pad * n * 4 <= RESIDENT_A_F32_BUDGET)
    if resident:
        recon_row = _mlem_forward_resident(sino_row, inv_sens_row, a_pad_i8, num_iter)
    else:
        recon_row = _mlem_forward_streamed(sino_row, inv_sens_row, a_pad_i8, num_iter)
    return recon_row.reshape(nxd, nxd)


# ---- pure-JAX reference (mirrors the PyTorch forward) -----------------------------
def mlem_reference(sino, sys_mat, num_iter, nxd, nrd, nphi):
    n = nxd * nxd
    p = nrd * nphi
    sens_image = (sys_mat.T @ jnp.ones((p, 1), jnp.float32)).reshape(nxd, nxd)
    recon = jnp.ones((nxd, nxd), jnp.float32)
    for _ in range(num_iter):
        fpsino = (sys_mat @ recon.reshape(n, 1)).reshape(nphi, nrd)
        ratio = sino / (fpsino + 1e-9)
        correction = (sys_mat.T @ ratio.reshape(p, 1)).reshape(nxd, nxd) / (sens_image + 1e-9)
        recon = recon * correction
    return recon


if __name__ == "__main__":
    # deterministic setup
    sys_mat_np = make_system_matrix(NXD, NRD, NPHI)

    # one-time host-side preparation (OUTSIDE jit): padded int8 A + 1/(sens+eps)
    a_pad_i8, inv_sens_row = prepare_mlem_operands(sys_mat_np, P_TILE)

    key = jax.random.PRNGKey(0)
    sino = jax.random.uniform(key, (NPHI, NRD), dtype=jnp.float32)  # non-negative sinogram

    # default (size-gated) path: A VMEM-resident at this toy size
    recon = mlem_net_forward(sino, a_pad_i8, inv_sens_row, num_iter=NUM_ITER, nxd=NXD)
    recon = jax.block_until_ready(recon)

    # also exercise the streamed (real-problem-size) structure at this size
    recon_streamed = mlem_net_forward(sino, a_pad_i8, inv_sens_row,
                                      num_iter=NUM_ITER, nxd=NXD, force_streamed=True)
    recon_streamed = jax.block_until_ready(recon_streamed)

    ref = mlem_reference(sino, jnp.asarray(sys_mat_np), NUM_ITER, NXD, NRD, NPHI)
    np.testing.assert_allclose(np.asarray(recon), np.asarray(ref), rtol=1e-4, atol=1e-4)
    np.testing.assert_allclose(np.asarray(recon_streamed), np.asarray(ref), rtol=1e-4, atol=1e-4)

    print("KERNEL_OK")
</pallas_src>

<mosaic_0001>
module attributes {stable_mosaic.version = 11 : i64} {
  func.func @_mlem_resident_kernel(%arg0: i32, %arg1: memref<1x512xf32, #tpu.memory_space<vmem>>, %arg2: memref<1x256xf32, #tpu.memory_space<vmem>>, %arg3: memref<512x256xi8, #tpu.memory_space<vmem>>, %arg4: memref<1x256xf32, #tpu.memory_space<vmem>>) attributes {dimension_semantics = [#tpu.dimension_semantics<arbitrary>], iteration_bounds = array<i64: 1>, scalar_prefetch = 0 : i64, scratch_operands = 0 : i64, tpu.core_type = #tpu.core_type<tc>, window_params = [{pipeline_mode = #tpu.pipeline_mode<synchronous>, transform_indices = @transform_0, window_bounds = array<i64: 1, 512>}, {pipeline_mode = #tpu.pipeline_mode<synchronous>, transform_indices = @transform_1, window_bounds = array<i64: 1, 256>}, {pipeline_mode = #tpu.pipeline_mode<synchronous>, transform_indices = @transform_2, window_bounds = array<i64: 512, 256>}, {pipeline_mode = #tpu.pipeline_mode<synchronous>, transform_indices = @transform_3, window_bounds = array<i64: 1, 256>}]} {
    %c0 = arith.constant 0 : index
    %c0_0 = arith.constant 0 : index
    %0 = vector.load %arg3[%c0, %c0_0] : memref<512x256xi8, #tpu.memory_space<vmem>>, vector<512x256xi8>
    %1 = arith.sitofp %0 : vector<512x256xi8> to vector<512x256xf32>
    %c0_1 = arith.constant 0 : index
    %c0_2 = arith.constant 0 : index
    %2 = vector.load %arg1[%c0_1, %c0_2] : memref<1x512xf32, #tpu.memory_space<vmem>>, vector<1x512xf32>
    %c0_3 = arith.constant 0 : index
    %c0_4 = arith.constant 0 : index
    %3 = vector.load %arg2[%c0_3, %c0_4] : memref<1x256xf32, #tpu.memory_space<vmem>>, vector<1x256xf32>
    %cst = arith.constant 1.000000e+00 : f32
    %4 = vector.broadcast %cst : f32 to vector<1x256xf32>
    %c0_i32 = arith.constant 0 : i32
    %c5_i32 = arith.constant 5 : i32
    %5 = arith.addi %c0_i32, %c5_i32 : i32
    %c1_i32 = arith.constant 1 : i32
    %6 = scf.for %arg5 = %c0_i32 to %5 step %c1_i32 iter_args(%arg6 = %4) -> (vector<1x256xf32>)  : i32 {
      %cst_7 = arith.constant dense<0.000000e+00> : vector<1x512xf32>
      %8 = tpu.matmul %arg6, %1, %cst_7 {dimension_numbers = #tpu.dot_dimension_numbers<[1], [1], [0], [0], [0, 0, 1, 0], [], []>} : vector<1x256xf32>, vector<512x256xf32>, vector<1x512xf32> -> vector<1x512xf32>
      %cst_8 = arith.constant 9.99999971E-10 : f32
      %9 = vector.broadcast %cst_8 : f32 to vector<1x512xf32>
      %10 = arith.addf %8, %9 : vector<1x512xf32>
      %11 = arith.divf %2, %10 : vector<1x512xf32>
      %cst_9 = arith.constant dense<0.000000e+00> : vector<1x256xf32>
      %12 = tpu.matmul %11, %1, %cst_9 {dimension_numbers = #tpu.dot_dimension_numbers<[1], [0], [0], [1], [0, 0, 1, 1], [], []>} : vector<1x512xf32>, vector<512x256xf32>, vector<1x256xf32> -> vector<1x256xf32>
      %13 = arith.mulf %12, %3 : vector<1x256xf32>
      %14 = arith.mulf %arg6, %13 : vector<1x256xf32>
      scf.yield %14 : vector<1x256xf32>
    }
    %c0_5 = arith.constant 0 : index
    %c0_6 = arith.constant 0 : index
    %7 = vector.load %arg4[%c0_5, %c0_6] : memref<1x256xf32, #tpu.memory_space<vmem>>, vector<1x256xf32>
    tpu.vector_store %arg4[%c0_5, %c0_6], %6 {strides = array<i32>} : memref<1x256xf32, #tpu.memory_space<vmem>>, vector<1x256xf32>,
    return
  }
  func.func @transform_0(%arg0: i32) -> (i32, i32) {
    %c0_i32 = arith.constant 0 : i32
    %c0_i32_0 = arith.constant 0 : i32
    %c0_i32_1 = arith.constant 0 : i32
    return %c0_i32, %c0_i32_0 : i32, i32
  }
  func.func @transform_1(%arg0: i32) -> (i32, i32) {
    %c0_i32 = arith.constant 0 : i32
    %c0_i32_0 = arith.constant 0 : i32
    %c0_i32_1 = arith.constant 0 : i32
    return %c0_i32, %c0_i32_0 : i32, i32
  }
  func.func @transform_2(%arg0: i32) -> (i32, i32) {
    %c0_i32 = arith.constant 0 : i32
    %c0_i32_0 = arith.constant 0 : i32
    %c0_i32_1 = arith.constant 0 : i32
    return %c0_i32, %c0_i32_0 : i32, i32
  }
  func.func @transform_3(%arg0: i32) -> (i32, i32) {
    %c0_i32 = arith.constant 0 : i32
    %c0_i32_0 = arith.constant 0 : i32
    %c0_i32_1 = arith.constant 0 : i32
    return %c0_i32, %c0_i32_0 : i32, i32
  }
}

</mosaic_0001>

<bundles_post_ra>
// kernel: mlem_net_forward.1
= control target key start
LH: loop header
LB: loop body
LE: loop exit
PB: predicated region body
PF: predicated region fallthrough
CT: control target
= control target key end

     0   :  { %8 = vsyncpa [#allocation3], 0  ;;  %s1048_s12 = smov [#allocation2]   ;;  %s1503_s0 = inlined_call_operand.vmem [shape: f32[1,512], index: 0, kind: input, shape index: {}]   ;;  %s1504_s1 = inlined_call_operand.vmem [shape: f32[1,256], index: 1, kind: input, shape index: {}]   ;;  %s1505_s2 = inlined_call_operand.hbm [shape: s8[512,256], index: 2, kind: input, shape index: {}]   ;;  %s1506_s3 = inlined_call_operand.vmem [shape: f32[1,256], index: 3, kind: output, shape index: {}]  }
   0x1   :  { %s18_s13 = sshll.u32 %s1048_s12, 4  ;;  %s19_s13 = int_to_ptr.vmem [resolvable:$true] %s18_s13 }
   0x2   :  { %s1010_s14 = scalar_lea.vmem %s19_s13, 4096  ;;  %p1015_p1 = scmp.lt.s32.totalorder %s19_s13, %s19_s13 }
   0x3   :  { %p1011_p0 = scmp.ne.s32.totalorder %s19_s13, %s1010_s14  ;;  %p1016_p2 = scmp.lt.s32.totalorder %s1010_s14, %s1010_s14 }
   0x5   :  { %p1017_p3 = por %p1016_p2, %p1015_p1 }
   0x7   :  { %p1018_p4 = pnand %p1017_p3, %p1011_p0 }
   0x9   :  { %1021 = shalt.err (!%p1018_p4)
}
   0xa   :  { %s1049_s15 = smov 256   ;;  %s1050_s16 = smov 16  }
   0xb   :  { %24 = dma.hbm_to_vmem [thread:$0]  %s1505_s2, 4096, %s19_s13, [#allocation3], %s1049_s15, %s1049_s15, %s1050_s16  }
   0xc   :  { %1034 = dma.done.wait [#allocation3], 4096  }
   0xd   :  { %1035 = vsyncadd [#allocation3], 4294963200  ;;  %v1075_v0 = vld [vmem:[#allocation2] sm:$0xff]  ;;  %v1077_v1 = vld [vmem:[#allocation2 + $0x8] sm:$0xff]  ;;  %v1149_v34 = vmov 1.0   ;;  %v1151_v35 = vmov 1.0  }
   0xe   :  { %v1079_v2 = vld [vmem:[#allocation2 + $0x10] sm:$0xff]  ;;  %v1081_v3 = vld [vmem:[#allocation2 + $0x18] sm:$0xff]  ;;  %v1083_v4 = vld [vmem:[#allocation2 + $0x20] sm:$0xff]  ;;  %s1153_s22 = smov 0  }
   0xf   :  { %v1085_v5 = vld [vmem:[#allocation2 + $0x28] sm:$0xff]  ;;  %v1087_v6 = vld [vmem:[#allocation2 + $0x30] sm:$0xff]  ;;  %v1089_v7 = vld [vmem:[#allocation2 + $0x38] sm:$0xff] }
  0x10   :  { %v1091_v8 = vld [vmem:[#allocation2 + $0x40] sm:$0xff]  ;;  %v1093_v9 = vld [vmem:[#allocation2 + $0x48] sm:$0xff]  ;;  %v1095_v10 = vld [vmem:[#allocation2 + $0x50] sm:$0xff] }
  0x11   :  { %v1097_v11 = vld [vmem:[#allocation2 + $0x58] sm:$0xff]  ;;  %v1099_v12 = vld [vmem:[#allocation2 + $0x60] sm:$0xff]  ;;  %v1101_v13 = vld [vmem:[#allocation2 + $0x68] sm:$0xff] }
  0x12   :  { %v1103_v14 = vld [vmem:[#allocation2 + $0x70] sm:$0xff]  ;;  %v1105_v15 = vld [vmem:[#allocation2 + $0x78] sm:$0xff]  ;;  %v1107_v16 = vld [vmem:[#allocation2 + $0x80] sm:$0xff] }
  0x13   :  { %v1109_v17 = vld [vmem:[#allocation2 + $0x88] sm:$0xff]  ;;  %v1111_v18 = vld [vmem:[#allocation2 + $0x90] sm:$0xff]  ;;  %v1113_v19 = vld [vmem:[#allocation2 + $0x98] sm:$0xff] }
  0x14   :  { %v1115_v20 = vld [vmem:[#allocation2 + $0xa0] sm:$0xff]  ;;  %v1117_v21 = vld [vmem:[#allocation2 + $0xa8] sm:$0xff]  ;;  %v1119_v22 = vld [vmem:[#allocation2 + $0xb0] sm:$0xff] }
  0x15   :  { %v1121_v23 = vld [vmem:[#allocation2 + $0xb8] sm:$0xff]  ;;  %v1123_v24 = vld [vmem:[#allocation2 + $0xc0] sm:$0xff]  ;;  %v1125_v25 = vld [vmem:[#allocation2 + $0xc8] sm:$0xff] }
  0x16   :  { %v1127_v26 = vld [vmem:[#allocation2 + $0xd0] sm:$0xff]  ;;  %v1129_v27 = vld [vmem:[#allocation2 + $0xd8] sm:$0xff]  ;;  %v1131_v28 = vld [vmem:[#allocation2 + $0xe0] sm:$0xff] }
  0x17   :  { %v1133_v29 = vld [vmem:[#allocation2 + $0xe8] sm:$0xff]  ;;  %v1135_v30 = vld [vmem:[#allocation2 + $0xf0] sm:$0xff]  ;;  %v1137_v31 = vld [vmem:[#allocation2 + $0xf8] sm:$0xff] }
  0x18   :  { %v1142_v32 = vld [vmem:[%s1503_s0] sm:$0xf] }
  0x19   :  { %v1147_v33 = vld [vmem:[%s1504_s1] sm:$0x3] }
  0x1a LB: > { %v716_v36 = vunpack.c.h.s8.bf16 %v1089_v7  ;;  %v780_v37 = vunpack.c.h.s8.bf16 %v1121_v23  ;;  %v718_v38 = vunpack.c.h.s8.bf16 %v1087_v6  ;;  %v782_v39 = vunpack.c.h.s8.bf16 %v1119_v22  ;;  %390 = vmatprep.mubr.f32.mxu0 %v1038_v34  ;;  %461 = vmatprep.mubr.f32.mxu1 %v1038_v34  ;;  %s323_s22 = sadd.s32 1, %s1046_s22   ;;  %s1046_s22 = sphi %s1153_s22, %s323_s22   ;;  %v1042_v35 = vphi %v1151_v35, %v1580_v35   ;;  %v1038_v34 = vphi %v1149_v34, %v1579_v34  }
  0x1b   : > { %v720_v40 = vunpack.c.l.s8.bf16 %v1089_v7  ;;  %v784_v41 = vunpack.c.l.s8.bf16 %v1121_v23  ;;  %v722_v42 = vunpack.c.l.s8.bf16 %v1087_v6  ;;  %v786_v43 = vunpack.c.l.s8.bf16 %v1119_v22  ;;  %p320_p5 = scmp.ge.s32.totalorder %s323_s22, 5  }
  0x1c   : > { %717 = vmatprep.subr.bf16.mxu0 %v716_v36  ;;  %781 = vmatprep.subr.bf16.mxu1 %v780_v37  ;;  %v724_v44 = vunpack.c.h.s8.bf16 %v1085_v5  ;;  %v788_v45 = vunpack.c.h.s8.bf16 %v1117_v21  ;;  %v726_v46 = vunpack.c.h.s8.bf16 %v1083_v4  ;;  %v790_v47 = vunpack.c.h.s8.bf16 %v1115_v20 }
  0x1d   : > { %719 = vmatpush1.bf16.xpose.msra.mxu0 %v718_v38  ;;  %783 = vmatpush1.bf16.xpose.msra.mxu1 %v782_v39  ;;  %v728_v48 = vunpack.c.l.s8.bf16 %v1085_v5  ;;  %v792_v49 = vunpack.c.l.s8.bf16 %v1117_v21  ;;  %v730_v50 = vunpack.c.l.s8.bf16 %v1083_v4  ;;  %v794_v51 = vunpack.c.l.s8.bf16 %v1115_v20 }
  0x1e   : > { %721 = vmatprep.subr.bf16.mxu0 %v720_v40  ;;  %785 = vmatprep.subr.bf16.mxu1 %v784_v41  ;;  %v732_v52 = vunpack.c.h.s8.bf16 %v1081_v3  ;;  %v796_v53 = vunpack.c.h.s8.bf16 %v1113_v19  ;;  %v734_v54 = vunpack.c.h.s8.bf16 %v1079_v2  ;;  %v798_v55 = vunpack.c.h.s8.bf16 %v1111_v18 }
  0x1f   : > { %v1508_v56 = vunpack.c.l.s8.bf16 %v1081_v3  ;;  %v1507_v57 = vunpack.c.l.s8.bf16 %v1113_v19  ;;  %v1512_v58 = vunpack.c.l.s8.bf16 %v1079_v2  ;;  %v1511_v59 = vunpack.c.l.s8.bf16 %v1111_v18 }
  0x20   : > { %v1510_v60 = vunpack.c.h.s8.bf16 %v1077_v1  ;;  %v1509_v61 = vunpack.c.h.s8.bf16 %v1109_v17  ;;  %v1516_v62 = vunpack.c.h.s8.bf16 %v1075_v0  ;;  %v1515_v63 = vunpack.c.h.s8.bf16 %v1107_v16 }
  0x25   : > { %723 = vmatpush1.bf16.xpose.msra.mxu0 %v722_v42  ;;  %787 = vmatpush1.bf16.xpose.msra.mxu1 %v786_v43 }
  0x26   : > { %725 = vmatprep.subr.bf16.mxu0 %v724_v44  ;;  %789 = vmatprep.subr.bf16.mxu1 %v788_v45 }
  0x2d   : > { %727 = vmatpush1.bf16.xpose.msra.mxu0 %v726_v46  ;;  %791 = vmatpush1.bf16.xpose.msra.mxu1 %v790_v47 }
  0x2e   : > { %729 = vmatprep.subr.bf16.mxu0 %v728_v48  ;;  %793 = vmatprep.subr.bf16.mxu1 %v792_v49 }
  0x35   : > { %731 = vmatpush1.bf16.xpose.msra.mxu0 %v730_v50  ;;  %795 = vmatpush1.bf16.xpose.msra.mxu1 %v794_v51 }
  0x36   : > { %733 = vmatprep.subr.bf16.mxu0 %v732_v52  ;;  %797 = vmatprep.subr.bf16.mxu1 %v796_v53 }
  0x3d   : > { %735 = vmatpush1.bf16.xpose.msra.mxu0 %v734_v54  ;;  %799 = vmatpush1.bf16.xpose.msra.mxu1 %v798_v55 }
  0x3e   : > { %737 = vmatprep.subr.bf16.mxu0 %v1508_v56  ;;  %801 = vmatprep.subr.bf16.mxu1 %v1507_v57  ;;  %v1514_v57 = vunpack.c.l.s8.bf16 %v1077_v1  ;;  %v1513_v56 = vunpack.c.l.s8.bf16 %v1109_v17 }
  0x45   : > { %739 = vmatpush1.bf16.xpose.msra.mxu0 %v1512_v58  ;;  %803 = vmatpush1.bf16.xpose.msra.mxu1 %v1511_v59  ;;  %v1518_v59 = vunpack.c.h.s8.bf16 %v1105_v15  ;;  %v1517_v58 = vunpack.c.h.s8.bf16 %v1137_v31 }
  0x46   : > { %741 = vmatprep.subr.bf16.mxu0 %v1510_v60  ;;  %805 = vmatprep.subr.bf16.mxu1 %v1509_v61  ;;  %v1520_v61 = vunpack.c.l.s8.bf16 %v1075_v0  ;;  %v1519_v60 = vunpack.c.l.s8.bf16 %v1107_v16 }
  0x4d   : > { %743 = vmatpush1.bf16.xpose.msra.mxu0 %v1516_v62  ;;  %807 = vmatpush1.bf16.xpose.msra.mxu1 %v1515_v63  ;;  %v1522_v63 = vunpack.c.l.s8.bf16 %v1105_v15  ;;  %v1521_v62 = vunpack.c.l.s8.bf16 %v1137_v31 }
  0x4e   : > { %745 = vmatprep.subr.bf16.mxu0 %v1514_v57  ;;  %809 = vmatprep.subr.bf16.mxu1 %v1513_v56  ;;  %v1524_v56 = vunpack.c.h.s8.bf16 %v1103_v14  ;;  %v1523_v57 = vunpack.c.h.s8.bf16 %v1135_v30 }
  0x55   : > { %747 = vmatpush1.bf16.xpose.msra.mxu0 %v1520_v61  ;;  %811 = vmatpush1.bf16.xpose.msra.mxu1 %v1519_v60  ;;  %v1526_v60 = vunpack.c.h.s8.bf16 %v1101_v13  ;;  %v1525_v61 = vunpack.c.h.s8.bf16 %v1133_v29 }
  0x56   : > { %749 = vmatprep.subr.bf16.mxu0 %v1518_v59  ;;  %813 = vmatprep.subr.bf16.mxu1 %v1517_v58  ;;  %v1528_v58 = vunpack.c.l.s8.bf16 %v1103_v14  ;;  %v1527_v59 = vunpack.c.l.s8.bf16 %v1135_v30 }
  0x5d   : > { %751 = vmatpush2.bf16.xpose.msra.mxu0 %v1524_v56  ;;  %815 = vmatpush2.bf16.xpose.msra.mxu1 %v1523_v57  ;;  %v1530_v57 = vunpack.c.l.s8.bf16 %v1101_v13  ;;  %v1529_v56 = vunpack.c.l.s8.bf16 %v1133_v29 }
  0x5e   : > { %753 = vmatprep.subr.bf16.mxu0 %v1522_v63  ;;  %817 = vmatprep.subr.bf16.mxu1 %v1521_v62  ;;  %v1532_v62 = vunpack.c.h.s8.bf16 %v1099_v12  ;;  %v1531_v63 = vunpack.c.h.s8.bf16 %v1131_v28 }
  0x65   : > { %755 = vmatpush2.bf16.xpose.msra.mxu0 %v1528_v58  ;;  %819 = vmatpush2.bf16.xpose.msra.mxu1 %v1527_v59  ;;  %v1534_v59 = vunpack.c.h.s8.bf16 %v1097_v11  ;;  %v1533_v58 = vunpack.c.h.s8.bf16 %v1129_v27 }
  0x66   : > { %757 = vmatprep.subr.bf16.mxu0 %v1526_v60  ;;  %821 = vmatprep.subr.bf16.mxu1 %v1525_v61  ;;  %v1536_v61 = vunpack.c.l.s8.bf16 %v1099_v12  ;;  %v1535_v60 = vunpack.c.l.s8.bf16 %v1131_v28 }
  0x6d   : > { %759 = vmatpush2.bf16.xpose.msra.mxu0 %v1532_v62  ;;  %823 = vmatpush2.bf16.xpose.msra.mxu1 %v1531_v63  ;;  %v1538_v63 = vunpack.c.l.s8.bf16 %v1097_v11  ;;  %v1537_v62 = vunpack.c.l.s8.bf16 %v1129_v27 }
  0x6e   : > { %761 = vmatprep.subr.bf16.mxu0 %v1530_v57  ;;  %825 = vmatprep.subr.bf16.mxu1 %v1529_v56  ;;  %v1540_v56 = vunpack.c.h.s8.bf16 %v1095_v10  ;;  %v1539_v57 = vunpack.c.h.s8.bf16 %v1127_v26 }
  0x75   : > { %763 = vmatpush2.bf16.xpose.msra.mxu0 %v1536_v61  ;;  %827 = vmatpush2.bf16.xpose.msra.mxu1 %v1535_v60  ;;  %v1542_v60 = vunpack.c.h.s8.bf16 %v1093_v9  ;;  %v1541_v61 = vunpack.c.h.s8.bf16 %v1125_v25 }
  0x76   : > { %765 = vmatprep.subr.bf16.mxu0 %v1534_v59  ;;  %829 = vmatprep.subr.bf16.mxu1 %v1533_v58  ;;  %v770_v58 = vunpack.c.l.s8.bf16 %v1095_v10  ;;  %v834_v59 = vunpack.c.l.s8.bf16 %v1127_v26 }
  0x7d   : > { %767 = vmatpush2.bf16.xpose.msra.mxu0 %v1540_v56  ;;  %831 = vmatpush2.bf16.xpose.msra.mxu1 %v1539_v57  ;;  %v776_v57 = vunpack.c.l.s8.bf16 %v1093_v9  ;;  %v840_v56 = vunpack.c.l.s8.bf16 %v1125_v25 }
  0x7e   : > { %769 = vmatprep.subr.bf16.mxu0 %v1538_v63  ;;  %833 = vmatprep.subr.bf16.mxu1 %v1537_v62  ;;  %v774_v62 = vunpack.c.h.s8.bf16 %v1091_v8  ;;  %v838_v63 = vunpack.c.h.s8.bf16 %v1123_v24 }
  0x85   : > { %771 = vmatpush2.bf16.xpose.msra.mxu0 %v770_v58  ;;  %835 = vmatpush2.bf16.xpose.msra.mxu1 %v834_v59 }
  0x86   : > { %773 = vmatprep.subr.bf16.mxu0 %v1542_v60  ;;  %837 = vmatprep.subr.bf16.mxu1 %v1541_v61  ;;  %v778_v61 = vunpack.c.l.s8.bf16 %v1091_v8  ;;  %v842_v60 = vunpack.c.l.s8.bf16 %v1123_v24 }
  0x8d   : > { %775 = vmatpush2.bf16.xpose.msra.mxu0 %v774_v62  ;;  %839 = vmatpush2.bf16.xpose.msra.mxu1 %v838_v63 }
  0x8e   : > { %777 = vmatprep.subr.bf16.mxu0 %v776_v57  ;;  %841 = vmatprep.subr.bf16.mxu1 %v840_v56 }
  0x95   : > { %779 = vmatpush2.bf16.xpose.msra.mxu0 %v778_v61  ;;  %843 = vmatpush2.bf16.xpose.msra.mxu1 %v842_v60 }
  0x96   : > { %845 = vmatprep.subr.bf16.mxu0 %v716_v36  ;;  %909 = vmatprep.subr.bf16.mxu1 %v780_v37  ;;  %v1543_v36 = vunpack.c.l.s8.bf16 %v1081_v3  ;;  %v1544_v37 = vunpack.c.l.s8.bf16 %v1113_v19 }
  0x9c   : > { %391 = vmatmul.mubr.f32.vlgmr.msra.gmra.mxu0 %v1042_v35  ;;  %462 = vmatmul.mubr.f32.vlgmr.msra.gmra.mxu1 %v1042_v35 }
  0x9d   : > { %847 = vmatpush1.bf16.msra.mxu0 %v718_v38  ;;  %911 = vmatpush1.bf16.msra.mxu1 %v782_v39  ;;  %v1545_v38 = vunpack.c.l.s8.bf16 %v1079_v2  ;;  %v1546_v39 = vunpack.c.l.s8.bf16 %v1111_v18 }
  0x9e   : > { %849 = vmatprep.subr.bf16.mxu0 %v720_v40  ;;  %913 = vmatprep.subr.bf16.mxu1 %v784_v41  ;;  %v1547_v40 = vunpack.c.h.s8.bf16 %v1077_v1  ;;  %v1548_v41 = vunpack.c.h.s8.bf16 %v1109_v17 }
  0xa1   : > { %851 = vmatpush1.bf16.msra.mxu0 %v722_v42  ;;  %915 = vmatpush1.bf16.msra.mxu1 %v786_v43  ;;  %v1549_v42 = vunpack.c.h.s8.bf16 %v1075_v0  ;;  %v1550_v43 = vunpack.c.h.s8.bf16 %v1107_v16 }
  0xa2   : > { %853 = vmatprep.subr.bf16.mxu0 %v724_v44  ;;  %917 = vmatprep.subr.bf16.mxu1 %v788_v45  ;;  %v1551_v44 = vunpack.c.l.s8.bf16 %v1077_v1  ;;  %v1552_v45 = vunpack.c.l.s8.bf16 %v1109_v17 }
  0xa5   : > { %855 = vmatpush1.bf16.msra.mxu0 %v726_v46  ;;  %919 = vmatpush1.bf16.msra.mxu1 %v790_v47  ;;  %v1553_v46 = vunpack.c.l.s8.bf16 %v1075_v0  ;;  %v1554_v47 = vunpack.c.l.s8.bf16 %v1107_v16 }
  0xa6   : > { %857 = vmatprep.subr.bf16.mxu0 %v728_v48  ;;  %921 = vmatprep.subr.bf16.mxu1 %v792_v49  ;;  %v1555_v48 = vunpack.c.h.s8.bf16 %v1105_v15  ;;  %v1556_v49 = vunpack.c.h.s8.bf16 %v1137_v31 }
  0xa9   : > { %859 = vmatpush1.bf16.msra.mxu0 %v730_v50  ;;  %923 = vmatpush1.bf16.msra.mxu1 %v794_v51  ;;  %v1557_v50 = vunpack.c.h.s8.bf16 %v1103_v14  ;;  %v1558_v51 = vunpack.c.h.s8.bf16 %v1135_v30 }
  0xaa   : > { %861 = vmatprep.subr.bf16.mxu0 %v732_v52  ;;  %925 = vmatprep.subr.bf16.mxu1 %v796_v53  ;;  %v1559_v52 = vunpack.c.l.s8.bf16 %v1105_v15  ;;  %v1560_v53 = vunpack.c.l.s8.bf16 %v1137_v31 }
  0xad   : > { %863 = vmatpush1.bf16.msra.mxu0 %v734_v54  ;;  %927 = vmatpush1.bf16.msra.mxu1 %v798_v55  ;;  %v1561_v54 = vunpack.c.l.s8.bf16 %v1103_v14  ;;  %v1562_v55 = vunpack.c.l.s8.bf16 %v1135_v30 }
  0xae   : > { %865 = vmatprep.subr.bf16.mxu0 %v1543_v36  ;;  %929 = vmatprep.subr.bf16.mxu1 %v1544_v37  ;;  %v1563_v36 = vunpack.c.h.s8.bf16 %v1101_v13  ;;  %v1564_v37 = vunpack.c.h.s8.bf16 %v1133_v29 }
  0xb1   : > { %867 = vmatpush1.bf16.msra.mxu0 %v1545_v38  ;;  %931 = vmatpush1.bf16.msra.mxu1 %v1546_v39  ;;  %v1565_v38 = vunpack.c.h.s8.bf16 %v1099_v12  ;;  %v1566_v39 = vunpack.c.h.s8.bf16 %v1131_v28 }
  0xb2   : > { %869 = vmatprep.subr.bf16.mxu0 %v1547_v40  ;;  %933 = vmatprep.subr.bf16.mxu1 %v1548_v41  ;;  %v1567_v40 = vunpack.c.l.s8.bf16 %v1101_v13  ;;  %v1568_v41 = vunpack.c.l.s8.bf16 %v1133_v29 }
  0xb5   : > { %871 = vmatpush1.bf16.msra.mxu0 %v1549_v42  ;;  %935 = vmatpush1.bf16.msra.mxu1 %v1550_v43  ;;  %v1569_v42 = vunpack.c.l.s8.bf16 %v1099_v12  ;;  %v1570_v43 = vunpack.c.l.s8.bf16 %v1131_v28 }
  0xb6   : > { %873 = vmatprep.subr.bf16.mxu0 %v1551_v44  ;;  %937 = vmatprep.subr.bf16.mxu1 %v1552_v45  ;;  %v1571_v44 = vunpack.c.h.s8.bf16 %v1097_v11  ;;  %v1572_v45 = vunpack.c.h.s8.bf16 %v1129_v27 }
  0xb9   : > { %875 = vmatpush1.bf16.msra.mxu0 %v1553_v46  ;;  %939 = vmatpush1.bf16.msra.mxu1 %v1554_v47  ;;  %v1573_v46 = vunpack.c.h.s8.bf16 %v1095_v10  ;;  %v1574_v47 = vunpack.c.h.s8.bf16 %v1127_v26 }
  0xba   : > { %877 = vmatprep.subr.bf16.mxu0 %v1555_v48  ;;  %941 = vmatprep.subr.bf16.mxu1 %v1556_v49  ;;  %v1575_v48 = vunpack.c.l.s8.bf16 %v1097_v11  ;;  %v1576_v49 = vunpack.c.l.s8.bf16 %v1129_v27 }
  0xbd   : > { %879 = vmatpush2.bf16.msra.mxu0 %v1557_v50  ;;  %943 = vmatpush2.bf16.msra.mxu1 %v1558_v51  ;;  %v1577_v50 = vunpack.c.h.s8.bf16 %v1093_v9  ;;  %v1578_v51 = vunpack.c.h.s8.bf16 %v1125_v25 }
  0xbe   : > { %881 = vmatprep.subr.bf16.mxu0 %v1559_v52  ;;  %945 = vmatprep.subr.bf16.mxu1 %v1560_v53  ;;  %v477_v52 = vlaneseq }
  0xc0   :  { %vm697_vm0 = vcmp.lt.s32.totalorder (%p320_p5), %v477_v52, 256 }
  0xc1   : > { %883 = vmatpush2.bf16.msra.mxu0 %v1561_v54  ;;  %947 = vmatpush2.bf16.msra.mxu1 %v1562_v55 }
  0xc2   : > { %885 = vmatprep.subr.bf16.mxu0 %v1563_v36  ;;  %949 = vmatprep.subr.bf16.mxu1 %v1564_v37 }
  0xc5   : > { %887 = vmatpush2.bf16.msra.mxu0 %v1565_v38  ;;  %951 = vmatpush2.bf16.msra.mxu1 %v1566_v39 }
  0xc6   : > { %889 = vmatprep.subr.bf16.mxu0 %v1567_v40  ;;  %953 = vmatprep.subr.bf16.mxu1 %v1568_v41 }
  0xc9   : > { %891 = vmatpush2.bf16.msra.mxu0 %v1569_v42  ;;  %955 = vmatpush2.bf16.msra.mxu1 %v1570_v43 }
  0xca   : > { %893 = vmatprep.subr.bf16.mxu0 %v1571_v44  ;;  %957 = vmatprep.subr.bf16.mxu1 %v1572_v45 }
  0xcd   : > { %895 = vmatpush2.bf16.msra.mxu0 %v1573_v46  ;;  %959 = vmatpush2.bf16.msra.mxu1 %v1574_v47 }
  0xce   : > { %897 = vmatprep.subr.bf16.mxu0 %v1575_v48  ;;  %961 = vmatprep.subr.bf16.mxu1 %v1576_v49 }
  0xd1   : > { %899 = vmatpush2.bf16.msra.mxu0 %v770_v58  ;;  %963 = vmatpush2.bf16.msra.mxu1 %v834_v59  ;;  %v1051_v58 = vmov 1966171168  }
  0xd2   : > { %901 = vmatprep.subr.bf16.mxu0 %v1577_v50  ;;  %965 = vmatprep.subr.bf16.mxu1 %v1578_v51  ;;  %v475_v59 = vunpack.c.l.s4 %v1051_v58 }
  0xd4   : > { %v476_v53 = vunpack.c.0.s8 %v475_v59 }
  0xd5   : > { %903 = vmatpush2.bf16.msra.mxu0 %v774_v62  ;;  %967 = vmatpush2.bf16.msra.mxu1 %v838_v63  ;;  %v478_v62 = vshrl.u32 %v477_v52, 7 }
  0xd6   : > { %905 = vmatprep.subr.bf16.mxu0 %v776_v57  ;;  %969 = vmatprep.subr.bf16.mxu1 %v840_v56 }
  0xd7   : > { %v479_v39 = vsub.s32 %v476_v53, %v478_v62  ;;  %v506_v44 = vsub.s32 1, %v478_v62  ;;  %v514_v45 = vsub.s32 3, %v478_v62  ;;  %v502_v46 = vsub.s32 0, %v478_v62 }
  0xd8   : > { %v510_v47 = vsub.s32 2, %v478_v62 }
  0xd9   : > { %907 = vmatpush2.bf16.msra.mxu0 %v778_v61  ;;  %971 = vmatpush2.bf16.msra.mxu1 %v842_v60  ;;  %v666_v53 = vrot.slane %v1147_v33, %v502_v46 }
 0x15c   : > { %v392_v54 = vpop.f32.mrf.mxu0  ;;  %v463_v55 = vpop.f32.mrf.mxu1 }
 0x15d   : > { %v393_v63 = vadd.f32 1e-09, %v392_v54  ;;  %v464_v57 = vadd.f32 1e-09, %v463_v55 }
 0x15e   : > { %v394_v36 = vpop.f32.mrf.mxu0  ;;  %v465_v37 = vpop.f32.mrf.mxu1 }
 0x15f   : > { %v395_v38 = vadd.f32 1e-09, %v394_v36  ;;  %v466_v56 = vadd.f32 1e-09, %v465_v37  ;;  %v670_v36 = vrot.slane %v1147_v33, %v506_v44 }
 0x161   : > { %v472_v40 = vcombine.low %v393_v63, %v395_v38  ;;  %v473_v41 = vcombine.low %v464_v57, %v466_v56 }
 0x163   : > { %v480_v61 = vrot.slane %v472_v40, %v479_v39  ;;  %v487_v42 = vrot.slane %v473_v41, %v479_v39 }
 0x165   : > { %v488_v43 = vcombine.low %v480_v61, %v487_v42 }
 0x167   : > { %v495_v60 = vrot.slane %v488_v43, %v479_v39 }
 0x169   : > { %1000 = vrcp.f32 %v495_v60 }
 0x176   : > { %v1001_v48 = vpop.eup %1000 }
 0x177   : > { %v498_v49 = vmul.f32 %v1001_v48, %v1142_v32 }
 0x179   : > { %v507_v50 = vrot.slane %v498_v49, %v506_v44  ;;  %v515_v51 = vrot.slane %v498_v49, %v514_v45  ;;  %v503_v58 = vrot.slane %v498_v49, %v502_v46  ;;  %v511_v59 = vrot.slane %v498_v49, %v510_v47 }
 0x17b   : > { %584 = vmatprep.mubr.f32.mxu0 %v507_v50  ;;  %655 = vmatprep.mubr.f32.mxu1 %v515_v51 }
 0x17c   : > { %585 = vmatmul.mubr.f32.vlgmr.msra.gmra.mxu0 %v503_v58  ;;  %656 = vmatmul.mubr.f32.vlgmr.msra.gmra.mxu1 %v511_v59 }
 0x23c   : > { %v586_v54 = vpop.f32.mrf.mxu0  ;;  %v657_v55 = vpop.f32.mrf.mxu1 }
 0x23d   : > { %v658_v63 = vadd.f32 %v657_v55, %v586_v54 }
 0x23e   : > { %v588_v37 = vpop.f32.mrf.mxu0  ;;  %v659_v62 = vpop.f32.mrf.mxu1 }
 0x23f   : > { %v673_v57 = vmul.f32 %v666_v53, %v658_v63  ;;  %v660_v38 = vadd.f32 %v659_v62, %v588_v37 }
 0x241   : > { %v675_v56 = vmul.f32 %v1042_v35, %v673_v57   ;;  %v674_v40 = vmul.f32 %v670_v36, %v660_v38  ;;  %322 = sbr.rel (!%p320_p5) target bundleno = 26 (0x1a), region = 43 }
 0x243   : > { %v676_v41 = vmul.f32 %v1038_v34, %v674_v40   ;;  %v1580_v35 = vmov %v675_v56 }
 0x245   : > { %v1579_v34 = vmov %v676_v41  ;;  %v679_v61 = vcombine.low (%p320_p5), %v675_v56, %v676_v41 }
 0x247   :  { %v686_v42 = vrot.slane %v679_v61, %v479_v39 }
 0x249   :  { %v693_v43 = vrot.slane %v686_v42, %v479_v39 }
 0x24b   :  { %699 = vst.msk [vmem:[%s1506_s3] sm:$0x3] %vm697_vm0, %v693_v43 }
 0x24c   :  { %704 = vsyncpa [#allocation3], 1 }

</bundles_post_ra>
